<compile_context>
chip_gen: v7x
topology: tpu7x:2x2x1
jax: 0.10.0
libtpu: 0.0.40
codegen_flags: <defaults>
</compile_context>

<pallas_src>
import functools

import jax
import jax.numpy as jnp
from jax import lax
from jax.experimental import pallas as pl
from jax.experimental.pallas import tpu as pltpu


def _pa_kernel(x_ref, w_ref, b_ref, col_ref, o_ref, *, H, W):
    """One (R, H*W) slab per grid step.

    x_ref   : (R, H*W)  flattened image planes, one (batch, channel) per row
    w_ref   : (R, 9)    per-row depthwise 3x3 taps, tap index t = ky*3 + kx
    b_ref   : (R, 1)    per-row bias
    col_ref : (1, H*W)  column index (w coordinate) of every flattened position
    o_ref   : (R, H*W)  x * sigmoid(dwconv(x) + b)
    """
    HW = H * W

    xf = x_ref[...].astype(jnp.float32)
    w = w_ref[...].astype(jnp.float32)
    b = b_ref[...].astype(jnp.float32)

    col = col_ref[...]                                   # (1, HW) int32, col = f % W
    f = lax.broadcasted_iota(jnp.int32, (1, HW), 1)      # flattened index h*W + w

    # Pre-masked source copies, built once and reused by 3 taps apiece.
    #   dx=+1 taps read source column w+1: the only invalid reads wrap to
    #   source column 0, so zeroing column 0 of the source handles all three.
    #   dx=-1 taps symmetrically wrap to source column W-1.
    xr0 = jnp.where(col != 0, xf, 0.0)        # source for all dx = +1 taps
    xl0 = jnp.where(col != W - 1, xf, 0.0)    # source for all dx = -1 taps

    def tap(src, dy, dx):
        # want src[f + s] at position f;  roll(x, k)[j] = x[(j - k) mod HW]
        s = dy * W + dx
        return pltpu.roll(src, (-s) % HW, axis=1)        # XLU lane rotate

    # dy = -1 group (source row h-1); vertically valid iff h >= 1  <=>  f >= W.
    p_up = (tap(xl0, -1, -1) * w[:, 0:1]
            + tap(xf, -1, 0) * w[:, 1:2]
            + tap(xr0, -1, 1) * w[:, 2:3])
    # dy = 0 group (always valid vertically); center tap needs no roll.
    p_mid = (tap(xl0, 0, -1) * w[:, 3:4]
             + xf * w[:, 4:5]
             + tap(xr0, 0, 1) * w[:, 5:6])
    # dy = +1 group; vertically valid iff h <= H-2  <=>  f < (H-1)*W.
    p_dn = (tap(xl0, 1, -1) * w[:, 6:7]
            + tap(xf, 1, 0) * w[:, 7:8]
            + tap(xr0, 1, 1) * w[:, 8:9])

    acc = (p_mid
           + jnp.where(f >= W, p_up, 0.0)
           + jnp.where(f < (H - 1) * W, p_dn, 0.0))

    # sigmoid(z) = 0.5 + 0.5 * tanh(0.5 * z): exact, tanh runs on the EUP slot
    # (no f32 divide on the saturated VALU slot).
    z = acc + b
    gate = 0.5 + 0.5 * jnp.tanh(0.5 * z)
    o_ref[...] = (xf * gate).astype(o_ref.dtype)


def _rows_per_block(n_rows, hw, itemsize, budget=4 << 20):
    """Rows (image planes) per block.

    Multiple of the packed sublane tile (8 for f32, 16 for bf16, 32 for int8),
    block <= ~4 MiB so double-buffered in/out blocks + f32 temporaries fit the
    48 MiB scoped-VMEM limit on every generation (incl. v7x's 64 MiB VMEM).
    Prefers >= 2 grid steps so v7x's two TensorCores both get work.
    """
    sub = 8 * max(1, 4 // max(1, itemsize))   # 8 f32, 16 bf16, 32 int8/fp8
    row_bytes = hw * itemsize

    # Large-plane guard: even one sublane group of rows busts the budget.
    # TODO(synk): a lane-axis tile with a 1-row halo would keep sublane packing
    # for gigantic single planes; here we just shrink the row count.
    if sub * row_bytes > budget:
        return max(1, min(n_rows, budget // max(1, row_bytes)))

    if n_rows <= sub:
        return n_rows

    r = sub
    while r + sub <= n_rows and (r + sub) * row_bytes <= budget:
        r += sub

    # Megacore: if everything landed in a single grid step, split into ~halves
    # on a sublane boundary so the "parallel" axis can span both v7x cores.
    if r >= n_rows and n_rows >= 2 * sub:
        half = -(-n_rows // 2)
        r_split = -(-half // sub) * sub
        if r_split < n_rows:
            r = min(r, r_split)
    return r


def pa_forward(x_nchw, weight, bias):
    """PA.forward: x * sigmoid(depthwise_conv3x3(x) + bias).

    x_nchw : (B, C, H, W)  (PyTorch NCHW; kept as-is, no transpose / no pad)
    weight : (C, 1, 3, 3)  depthwise conv weight (PyTorch layout)
    bias   : (C,)
    returns (B, C, H, W)
    """
    B, C, H, W = x_nchw.shape
    HW = H * W
    n_rows = B * C

    # Free reshape of a contiguous NCHW tensor: one (b, c) plane per row,
    # H*W flattened onto the lane axis.
    x2 = x_nchw.reshape(n_rows, HW)

    # Per-row tap weights / bias (row r holds channel r % C), laid out so each
    # tap is a cheap per-sublane scalar broadcast inside the kernel.
    w_rows = jnp.tile(weight.reshape(C, 9), (B, 1))          # (B*C, 9)
    b_rows = jnp.tile(bias.reshape(C, 1), (B, 1))            # (B*C, 1)
    # Precomputed column index (avoids an in-kernel vector modulo).
    col_ids = (jnp.arange(HW, dtype=jnp.int32) % W).reshape(1, HW)

    R = _rows_per_block(n_rows, HW, x_nchw.dtype.itemsize)
    grid = (pl.cdiv(n_rows, R),)

    kernel = functools.partial(_pa_kernel, H=H, W=W)

    out2 = pl.pallas_call(
        kernel,
        out_shape=jax.ShapeDtypeStruct((n_rows, HW), x_nchw.dtype),
        grid_spec=pltpu.PrefetchScalarGridSpec(
            num_scalar_prefetch=0,
            grid=grid,
            in_specs=[
                pl.BlockSpec((R, HW), lambda i: (i, 0)),
                pl.BlockSpec((R, 9), lambda i: (i, 0)),
                pl.BlockSpec((R, 1), lambda i: (i, 0)),
                pl.BlockSpec((1, HW), lambda i: (0, 0)),   # constant block
            ],
            out_specs=pl.BlockSpec((R, HW), lambda i: (i, 0)),
        ),
        compiler_params=pltpu.CompilerParams(
            dimension_semantics=("parallel",),
            vmem_limit_bytes=48 * 1024 * 1024),
    )(x2, w_rows, b_rows, col_ids)

    return out2.reshape(B, C, H, W)


def _reference(x_nchw, weight, bias):
    """Plain-JAX reference: depthwise conv (groups=C) + sigmoid gate."""
    C = x_nchw.shape[1]
    conv = lax.conv_general_dilated(
        x_nchw, weight,
        window_strides=(1, 1),
        padding=((1, 1), (1, 1)),
        dimension_numbers=("NCHW", "OIHW", "NCHW"),
        feature_group_count=C,
    ) + bias.reshape(1, C, 1, 1)
    return x_nchw * jax.nn.sigmoid(conv)


if __name__ == "__main__":
    key = jax.random.PRNGKey(0)
    k_x, k_w, k_b = jax.random.split(key, 3)

    B, C, H, W = 2, 4, 16, 16  # dim = C = 4
    x = jax.random.normal(k_x, (B, C, H, W), dtype=jnp.float32)

    # Deterministic init mimicking nn.Conv2d defaults (uniform, fan_in = 1*3*3).
    fan_in = 1 * 3 * 3
    bound = 1.0 / (fan_in ** 0.5)
    weight = jax.random.uniform(k_w, (C, 1, 3, 3), jnp.float32, -bound, bound)
    bias = jax.random.uniform(k_b, (C,), jnp.float32, -bound, bound)

    out = pa_forward(x, weight, bias)
    jax.block_until_ready(out)

    ref = _reference(x, weight, bias)
    assert jnp.allclose(out, ref, atol=5e-5, rtol=5e-5), "mismatch vs reference"

    print("KERNEL_OK")
</pallas_src>

<mosaic_0001>
module attributes {stable_mosaic.version = 11 : i64} {
  func.func @_pa_kernel(%arg0: i32, %arg1: memref<8x256xf32, #tpu.memory_space<vmem>>, %arg2: memref<8x9xf32, #tpu.memory_space<vmem>>, %arg3: memref<8x1xf32, #tpu.memory_space<vmem>>, %arg4: memref<1x256xi32, #tpu.memory_space<vmem>>, %arg5: memref<8x256xf32, #tpu.memory_space<vmem>>) attributes {dimension_semantics = [#tpu.dimension_semantics<parallel>], iteration_bounds = array<i64: 1>, scalar_prefetch = 0 : i64, scratch_operands = 0 : i64, tpu.core_type = #tpu.core_type<tc>, window_params = [{transform_indices = @transform_0, window_bounds = array<i64: 8, 256>}, {transform_indices = @transform_1, window_bounds = array<i64: 8, 9>}, {transform_indices = @transform_2, window_bounds = array<i64: 8, 1>}, {pipeline_mode = #tpu.pipeline_mode<synchronous>, transform_indices = @transform_3, window_bounds = array<i64: 1, 256>}, {transform_indices = @transform_4, window_bounds = array<i64: 8, 256>}]} {
    %c0 = arith.constant 0 : index
    %c0_0 = arith.constant 0 : index
    %0 = vector.load %arg1[%c0, %c0_0] : memref<8x256xf32, #tpu.memory_space<vmem>>, vector<8x256xf32>
    %c0_1 = arith.constant 0 : index
    %c0_2 = arith.constant 0 : index
    %1 = vector.load %arg2[%c0_1, %c0_2] : memref<8x9xf32, #tpu.memory_space<vmem>>, vector<8x9xf32>
    %c0_3 = arith.constant 0 : index
    %c0_4 = arith.constant 0 : index
    %2 = vector.load %arg3[%c0_3, %c0_4] : memref<8x1xf32, #tpu.memory_space<vmem>>, vector<8x1xf32>
    %c0_5 = arith.constant 0 : index
    %c0_6 = arith.constant 0 : index
    %3 = vector.load %arg4[%c0_5, %c0_6] : memref<1x256xi32, #tpu.memory_space<vmem>>, vector<1x256xi32>
    %4 = tpu.iota {dimensions = array<i32: 1>} : vector<1x256xi32>
    %c0_i32 = arith.constant 0 : i32
    %5 = vector.broadcast %c0_i32 : i32 to vector<1x256xi32>
    %6 = arith.cmpi ne, %3, %5 : vector<1x256xi32>
    %cst = arith.constant 0.000000e+00 : f32
    %7 = vector.shape_cast %6 : vector<1x256xi1> to vector<1x256xi1>
    %8 = vector.broadcast %7 : vector<1x256xi1> to vector<8x256xi1>
    %9 = vector.broadcast %cst : f32 to vector<8x256xf32>
    %10 = arith.select %8, %0, %9 : vector<8x256xi1>, vector<8x256xf32>
    %c15_i32 = arith.constant 15 : i32
    %11 = vector.broadcast %c15_i32 : i32 to vector<1x256xi32>
    %12 = arith.cmpi ne, %3, %11 : vector<1x256xi32>
    %cst_7 = arith.constant 0.000000e+00 : f32
    %13 = vector.shape_cast %12 : vector<1x256xi1> to vector<1x256xi1>
    %14 = vector.broadcast %13 : vector<1x256xi1> to vector<8x256xi1>
    %15 = vector.broadcast %cst_7 : f32 to vector<8x256xf32>
    %16 = arith.select %14, %0, %15 : vector<8x256xi1>, vector<8x256xf32>
    %c17_i32 = arith.constant 17 : i32
    %17 = tpu.dynamic_rotate %16 by %c17_i32 dim 1 : vector<8x256xf32>, i32 -> vector<8x256xf32>
    %18 = vector.extract_strided_slice %1 {offsets = [0, 0], sizes = [8, 1], strides = [1, 1]} : vector<8x9xf32> to vector<8x1xf32>
    %19 = vector.broadcast %18 : vector<8x1xf32> to vector<8x256xf32>
    %20 = arith.mulf %17, %19 : vector<8x256xf32>
    %c16_i32 = arith.constant 16 : i32
    %21 = tpu.dynamic_rotate %0 by %c16_i32 dim 1 : vector<8x256xf32>, i32 -> vector<8x256xf32>
    %22 = vector.extract_strided_slice %1 {offsets = [0, 1], sizes = [8, 1], strides = [1, 1]} : vector<8x9xf32> to vector<8x1xf32>
    %23 = vector.broadcast %22 : vector<8x1xf32> to vector<8x256xf32>
    %24 = arith.mulf %21, %23 : vector<8x256xf32>
    %25 = arith.addf %20, %24 : vector<8x256xf32>
    %c15_i32_8 = arith.constant 15 : i32
    %26 = tpu.dynamic_rotate %10 by %c15_i32_8 dim 1 : vector<8x256xf32>, i32 -> vector<8x256xf32>
    %27 = vector.extract_strided_slice %1 {offsets = [0, 2], sizes = [8, 1], strides = [1, 1]} : vector<8x9xf32> to vector<8x1xf32>
    %28 = vector.broadcast %27 : vector<8x1xf32> to vector<8x256xf32>
    %29 = arith.mulf %26, %28 : vector<8x256xf32>
    %30 = arith.addf %25, %29 : vector<8x256xf32>
    %c1_i32 = arith.constant 1 : i32
    %31 = tpu.dynamic_rotate %16 by %c1_i32 dim 1 : vector<8x256xf32>, i32 -> vector<8x256xf32>
    %32 = vector.extract_strided_slice %1 {offsets = [0, 3], sizes = [8, 1], strides = [1, 1]} : vector<8x9xf32> to vector<8x1xf32>
    %33 = vector.broadcast %32 : vector<8x1xf32> to vector<8x256xf32>
    %34 = arith.mulf %31, %33 : vector<8x256xf32>
    %35 = vector.extract_strided_slice %1 {offsets = [0, 4], sizes = [8, 1], strides = [1, 1]} : vector<8x9xf32> to vector<8x1xf32>
    %36 = vector.broadcast %35 : vector<8x1xf32> to vector<8x256xf32>
    %37 = arith.mulf %0, %36 : vector<8x256xf32>
    %38 = arith.addf %34, %37 : vector<8x256xf32>
    %c255_i32 = arith.constant 255 : i32
    %39 = tpu.dynamic_rotate %10 by %c255_i32 dim 1 : vector<8x256xf32>, i32 -> vector<8x256xf32>
    %40 = vector.extract_strided_slice %1 {offsets = [0, 5], sizes = [8, 1], strides = [1, 1]} : vector<8x9xf32> to vector<8x1xf32>
    %41 = vector.broadcast %40 : vector<8x1xf32> to vector<8x256xf32>
    %42 = arith.mulf %39, %41 : vector<8x256xf32>
    %43 = arith.addf %38, %42 : vector<8x256xf32>
    %c241_i32 = arith.constant 241 : i32
    %44 = tpu.dynamic_rotate %16 by %c241_i32 dim 1 : vector<8x256xf32>, i32 -> vector<8x256xf32>
    %45 = vector.extract_strided_slice %1 {offsets = [0, 6], sizes = [8, 1], strides = [1, 1]} : vector<8x9xf32> to vector<8x1xf32>
    %46 = vector.broadcast %45 : vector<8x1xf32> to vector<8x256xf32>
    %47 = arith.mulf %44, %46 : vector<8x256xf32>
    %c240_i32 = arith.constant 240 : i32
    %48 = tpu.dynamic_rotate %0 by %c240_i32 dim 1 : vector<8x256xf32>, i32 -> vector<8x256xf32>
    %49 = vector.extract_strided_slice %1 {offsets = [0, 7], sizes = [8, 1], strides = [1, 1]} : vector<8x9xf32> to vector<8x1xf32>
    %50 = vector.broadcast %49 : vector<8x1xf32> to vector<8x256xf32>
    %51 = arith.mulf %48, %50 : vector<8x256xf32>
    %52 = arith.addf %47, %51 : vector<8x256xf32>
    %c239_i32 = arith.constant 239 : i32
    %53 = tpu.dynamic_rotate %10 by %c239_i32 dim 1 : vector<8x256xf32>, i32 -> vector<8x256xf32>
    %54 = vector.extract_strided_slice %1 {offsets = [0, 8], sizes = [8, 1], strides = [1, 1]} : vector<8x9xf32> to vector<8x1xf32>
    %55 = vector.broadcast %54 : vector<8x1xf32> to vector<8x256xf32>
    %56 = arith.mulf %53, %55 : vector<8x256xf32>
    %57 = arith.addf %52, %56 : vector<8x256xf32>
    %c16_i32_9 = arith.constant 16 : i32
    %58 = vector.broadcast %c16_i32_9 : i32 to vector<1x256xi32>
    %59 = arith.cmpi sge, %4, %58 : vector<1x256xi32>
    %cst_10 = arith.constant 0.000000e+00 : f32
    %60 = vector.shape_cast %59 : vector<1x256xi1> to vector<1x256xi1>
    %61 = vector.broadcast %60 : vector<1x256xi1> to vector<8x256xi1>
    %62 = vector.broadcast %cst_10 : f32 to vector<8x256xf32>
    %63 = arith.select %61, %30, %62 : vector<8x256xi1>, vector<8x256xf32>
    %64 = arith.addf %43, %63 : vector<8x256xf32>
    %c240_i32_11 = arith.constant 240 : i32
    %65 = vector.broadcast %c240_i32_11 : i32 to vector<1x256xi32>
    %66 = arith.cmpi slt, %4, %65 : vector<1x256xi32>
    %cst_12 = arith.constant 0.000000e+00 : f32
    %67 = vector.shape_cast %66 : vector<1x256xi1> to vector<1x256xi1>
    %68 = vector.broadcast %67 : vector<1x256xi1> to vector<8x256xi1>
    %69 = vector.broadcast %cst_12 : f32 to vector<8x256xf32>
    %70 = arith.select %68, %57, %69 : vector<8x256xi1>, vector<8x256xf32>
    %71 = arith.addf %64, %70 : vector<8x256xf32>
    %72 = vector.broadcast %2 : vector<8x1xf32> to vector<8x256xf32>
    %73 = arith.addf %71, %72 : vector<8x256xf32>
    %cst_13 = arith.constant 5.000000e-01 : f32
    %74 = vector.broadcast %cst_13 : f32 to vector<8x256xf32>
    %75 = arith.mulf %74, %73 : vector<8x256xf32>
    %76 = math.tanh %75 : vector<8x256xf32>
    %cst_14 = arith.constant 5.000000e-01 : f32
    %77 = vector.broadcast %cst_14 : f32 to vector<8x256xf32>
    %78 = arith.mulf %77, %76 : vector<8x256xf32>
    %cst_15 = arith.constant 5.000000e-01 : f32
    %79 = vector.broadcast %cst_15 : f32 to vector<8x256xf32>
    %80 = arith.addf %79, %78 : vector<8x256xf32>
    %81 = arith.mulf %0, %80 : vector<8x256xf32>
    %c0_16 = arith.constant 0 : index
    %c0_17 = arith.constant 0 : index
    %82 = vector.load %arg5[%c0_16, %c0_17] : memref<8x256xf32, #tpu.memory_space<vmem>>, vector<8x256xf32>
    tpu.vector_store %arg5[%c0_16, %c0_17], %81 {strides = array<i32>} : memref<8x256xf32, #tpu.memory_space<vmem>>, vector<8x256xf32>,
    return
  }
  func.func @transform_0(%arg0: i32) -> (i32, i32) {
    %c0_i32 = arith.constant 0 : i32
    %c0_i32_0 = arith.constant 0 : i32
    return %arg0, %c0_i32 : i32, i32
  }
  func.func @transform_1(%arg0: i32) -> (i32, i32) {
    %c0_i32 = arith.constant 0 : i32
    %c0_i32_0 = arith.constant 0 : i32
    return %arg0, %c0_i32 : i32, i32
  }
  func.func @transform_2(%arg0: i32) -> (i32, i32) {
    %c0_i32 = arith.constant 0 : i32
    %c0_i32_0 = arith.constant 0 : i32
    return %arg0, %c0_i32 : i32, i32
  }
  func.func @transform_3(%arg0: i32) -> (i32, i32) {
    %c0_i32 = arith.constant 0 : i32
    %c0_i32_0 = arith.constant 0 : i32
    %c0_i32_1 = arith.constant 0 : i32
    return %c0_i32, %c0_i32_0 : i32, i32
  }
  func.func @transform_4(%arg0: i32) -> (i32, i32) {
    %c0_i32 = arith.constant 0 : i32
    %c0_i32_0 = arith.constant 0 : i32
    return %arg0, %c0_i32 : i32, i32
  }
}

</mosaic_0001>

<bundles_post_ra>
// kernel: tpu_custom_call.1
= control target key start
LH: loop header
LB: loop body
LE: loop exit
PB: predicated region body
PF: predicated region fallthrough
CT: control target
= control target key end

     0   :  { %9 = vsyncpa [#allocation3], 0  ;;  %s466_s0 = inlined_call_operand.hbm [shape: f32[8,256], index: 0, kind: input, shape index: {}]   ;;  %s467_s1 = inlined_call_operand.vmem [shape: f32[8,9], index: 1, kind: input, shape index: {}]   ;;  %s468_s2 = inlined_call_operand.vmem [shape: f32[8,1], index: 2, kind: input, shape index: {}]   ;;  %s469_s3 = inlined_call_operand.vmem [shape: s32[1,256], index: 3, kind: input, shape index: {}]   ;;  %s470_s4 = inlined_call_operand.hbm [shape: f32[8,256], index: 4, kind: output, shape index: {}]  }
   0x1   :  { %10 = vsyncpa [#allocation4], 0  ;;  %s323_s15 = smov [#allocation2]   ;;  %s275_s19 = scalar_lea.hbm %s466_s0, 256 }
   0x2   :  { %s17_s16 = sshll.u32 %s323_s15, 4  ;;  %p276_p0 = scmp.ne.s32.totalorder %s466_s0, %s275_s19  ;;  %s18_s16 = int_to_ptr.vmem [resolvable:$true] %s17_s16 }
   0x3   :  { %p279_p1 = scmp.lt.u32.totalorder %s275_s19, %s466_s0 }
   0x5   :  { %p281_p2 = pnand %p279_p1, %p276_p0 }
   0x7   :  { %284 = shalt.err (!%p281_p2)
}
   0x8   :  { %s285_s24 = scalar_lea.vmem %s18_s16, 256  ;;  %p290_p4 = scmp.lt.s32.totalorder %s18_s16, %s18_s16 }
   0x9   :  { %p286_p3 = scmp.ne.s32.totalorder %s18_s16, %s285_s24  ;;  %p291_p5 = scmp.lt.s32.totalorder %s285_s24, %s285_s24 }
   0xb   :  { %p292_p6 = por %p291_p5, %p290_p4 }
   0xd   :  { %p293_p7 = pnand %p292_p6, %p286_p3 }
   0xf   :  { %296 = shalt.err (!%p293_p7)
}
  0x10   :  { %20 = dma.hbm_to_vmem [thread:$0]  %s466_s0, 256, %s18_s16, [#allocation3]  }
  0x11   :  { %319 = dma.done.wait [#allocation3], 256  }
  0x12   :  { %320 = vsyncadd [#allocation3], 4294967040  ;;  %v324_v0 = vmov 3   ;;  %v325_v1 = vmov 1   ;;  %v32_v2 = vld [vmem:[%s467_s1] sm:$0xff]  ;;  %v35_v3 = vlaneseq  ;;  %v326_v4 = vmov 4  }
  0x13   :  { %263 = vset.pattern.permute.xlu1 %v324_v0  ;;  %262 = vset.pattern.permute.xlu0 %v325_v1  ;;  %v327_v5 = vmov 6   ;;  %v34_v6 = vld [vmem:[%s469_s3] sm:$0x3]  ;;  %v328_v8 = vmov 2   ;;  %v329_v9 = vmov 8   ;;  %v330_v11 = vmov 0  }
  0x14   :  { %118 = vperm.xlu1 %263, %v32_v2   ;;  %88 = vperm.xlu0 %262, %v32_v2   ;;  %v41_v7 = vshrl.u32 %v35_v3, 7  ;;  %vm52_vm0 = vcmp.ne.s32.totalorder %v34_v6, 15  ;;  %vm38_vm1 = vcmp.ne.s32.totalorder %v34_v6, 0  ;;  %v331_v14 = vmov 7   ;;  %v386_v17 = vld [vmem:[#allocation2] sm:$0xff]  ;;  %s333_s0 = smov 16  }
  0x15   :  { %v53_v12 = vsel %vm52_vm0, 1, %v330_v11  ;;  %v39_v15 = vsel %vm38_vm1, 1, %v330_v11  ;;  %v332_v20 = vmov 5   ;;  %v390_v22 = vld [vmem:[#allocation2 + $0x8] sm:$0xff]  ;;  %s334_s1 = smov 1   ;;  %s335_s3 = smov 17  }
  0x16   :  { %v42_v10 = vsub.s32 0, %v41_v7  ;;  %v46_v16 = vsub.s32 1, %v41_v7  ;;  %s336_s5 = smov 15   ;;  %s337_s6 = smov 113   ;;  %v33_v27 = vld [vmem:[%s468_s2] sm:$0xff]  ;;  %v406_v45 = vand.u32 127, %v35_v3 }
  0x17   :  { %s338_s7 = smov 112   ;;  %s339_s8 = smov 127  }
  0x18   :  { %264 = vset.pattern.permute.xlu1 %v326_v4  ;;  %266 = vset.pattern.permute.xlu0 %v327_v5  ;;  %v57_v13 = vrot.slane %v53_v12, %v42_v10  ;;  %v43_v18 = vrot.slane %v39_v15, %v42_v10  ;;  %v61_v19 = vrot.slane %v53_v12, %v46_v16  ;;  %s340_s9 = smov 111   ;;  %vm84_vm6 = vcmp.lt.s32.totalorder %v406_v45, 16  ;;  %s341_s2 = smov [#allocation5]  }
  0x19   :  { %124 = vperm.xlu1 %264, %v32_v2   ;;  %154 = vperm.xlu0 %266, %v32_v2   ;;  %v47_v25 = vrot.slane %v39_v15, %v46_v16  ;;  %vm114_vm7 = vcmp.lt.s32.totalorder %v406_v45, 1  ;;  %vm70_vm8 = vcmp.lt.s32.totalorder %v406_v45, 17  ;;  %vm99_vm9 = vcmp.lt.s32.totalorder %v406_v45, 15  ;;  %s234_s12 = sshll.u32 %s341_s2, 4  ;;  %s235_s12 = int_to_ptr.vmem [resolvable:$true] %s234_s12 }
  0x1a   :  { %vm62_vm2 = vcmp.eq.s32.totalorder %v57_v13, 1  ;;  %vm48_vm3 = vcmp.eq.s32.totalorder %v43_v18, 1  ;;  %vm63_vm4 = vcmp.eq.s32.totalorder %v61_v19, 1  ;;  %vm150_vm10 = vcmp.lt.s32.totalorder %v406_v45, 113  ;;  %s297_s13 = scalar_lea.vmem %s235_s12, 256  ;;  %p302_p9 = scmp.lt.s32.totalorder %s235_s12, %s235_s12 }
  0x1b   :  { %v64_v21 = vsel %vm62_vm2, %v386_v17, 0.0  ;;  %v50_v23 = vsel %vm48_vm3, %v386_v17, 0.0  ;;  %v65_v24 = vsel %vm63_vm4, %v390_v22, 0.0  ;;  %vm49_vm5 = vcmp.eq.s32.totalorder %v47_v25, 1  ;;  %p298_p8 = scmp.ne.s32.totalorder %s235_s12, %s297_s13  ;;  %p303_p10 = scmp.lt.s32.totalorder %s297_s13, %s297_s13 }
  0x1c   :  { %v51_v26 = vsel %vm49_vm5, %v390_v22, 0.0  ;;  %vm163_vm11 = vcmp.lt.s32.totalorder %v406_v45, 112  ;;  %vm135_vm12 = vcmp.lt.s32.totalorder %v406_v45, 127  ;;  %v37_v58 = vadd.s32 128, %v406_v45 }
  0x1d   :  { %265 = vset.pattern.permute.xlu1 %v328_v8  ;;  %269 = vset.pattern.permute.xlu0 %v329_v9  ;;  %vm178_vm13 = vcmp.lt.s32.totalorder %v406_v45, 111  ;;  %vm189_vm14 = vcmp.ge.s32.totalorder %v406_v45, 16  ;;  %p304_p11 = por %p303_p10, %p302_p9 }
  0x1e   :  { %103 = vperm.xlu1 %265, %v32_v2   ;;  %182 = vperm.xlu0 %269, %v32_v2   ;;  %vm200_vm15 = vcmp.lt.s32.totalorder %v37_v58, 240 }
  0x1f   :  { %p305_p12 = pnand %p304_p11, %p298_p8 }
  0x22   :  { %267 = vset.pattern.permute.xlu1 %v331_v14  ;;  %270 = vset.pattern.permute.xlu0 %v330_v11 }
  0x23   :  { %167 = vperm.xlu1 %267, %v32_v2   ;;  %75 = vperm.xlu0 %270, %v32_v2  }
  0x27   :  { %268 = vset.pattern.permute.xlu1 %v332_v20  ;;  %80 = vrot.lane.b32.xlu0 %v386_v17, %s333_s0 }
  0x28   :  { %139 = vperm.xlu1 %268, %v32_v2  }
  0x2b   :  { %110 = vrot.lane.b32.xlu0 %v64_v21, %s334_s1 }
  0x2c   :  { %66 = vrot.lane.b32.xlu1 %v64_v21, %s335_s3 }
  0x2f   :  { %95 = vrot.lane.b32.xlu0 %v50_v23, %s336_s5 }
  0x30   :  { %68 = vrot.lane.b32.xlu1 %v65_v24, %s335_s3 }
  0x33   :  { %146 = vrot.lane.b32.xlu0 %v64_v21, %s337_s6 }
  0x34   :  { %82 = vrot.lane.b32.xlu1 %v390_v22, %s333_s0 }
  0x37   :  { %159 = vrot.lane.b32.xlu0 %v386_v17, %s338_s7 }
  0x38   :  { %112 = vrot.lane.b32.xlu1 %v65_v24, %s334_s1 }
  0x3b   :  { %131 = vrot.lane.b32.xlu0 %v50_v23, %s339_s8 }
  0x3c   :  { %97 = vrot.lane.b32.xlu1 %v51_v26, %s336_s5 }
  0x3f   :  { %174 = vrot.lane.b32.xlu0 %v50_v23, %s340_s9 }
  0x40   :  { %148 = vrot.lane.b32.xlu1 %v65_v24, %s337_s6 }
  0x43   :  { %211 = vperm.xlu0 %270, %v33_v27  }
  0x44   :  { %161 = vrot.lane.b32.xlu1 %v390_v22, %s338_s7 }
  0x48   :  { %133 = vrot.lane.b32.xlu1 %v51_v26, %s339_s8 }
  0x4c   :  { %176 = vrot.lane.b32.xlu1 %v51_v26, %s340_s9 }
  0x93   :  { %v119_v28 = vpop.permute.xlu1 %118  ;;  %v89_v29 = vpop.permute.xlu0 %88 }
  0x98   :  { %v125_v30 = vpop.permute.xlu1 %124  ;;  %v401_v31 = vpop.permute.xlu0 %154 }
  0x99   :  { %v127_v59 = vmul.f32 %v125_v30, %v386_v17  ;;  %v128_v60 = vmul.f32 %v125_v30, %v390_v22 }
  0x9d   :  { %v104_v32 = vpop.permute.xlu1 %103  ;;  %v403_v33 = vpop.permute.xlu0 %182 }
  0xa2   :  { %v168_v34 = vpop.permute.xlu1 %167  ;;  %v76_v35 = vpop.permute.xlu0 %75 }
  0xa6   :  { %v81_v36 = vpop.permute.xlu0 %80 }
  0xa7   :  { %v140_v37 = vpop.permute.xlu1 %139 }
  0xaa   :  { %v111_v39 = vpop.permute.xlu0 %110 }
  0xab   :  { %v67_v38 = vpop.permute.xlu1 %66 }
  0xae   :  { %v96_v41 = vpop.permute.xlu0 %95 }
  0xaf   :  { %v69_v40 = vpop.permute.xlu1 %68 }
  0xb0   :  { %v72_v51 = vsel %vm70_vm8, %v69_v40, %v67_v38  ;;  %v71_v61 = vsel %vm70_vm8, %v67_v38, %v69_v40 }
  0xb1   :  { %v78_v62 = vmul.f32 %v76_v35, %v72_v51  ;;  %v79_v18 = vmul.f32 %v76_v35, %v71_v61 }
  0xb2   :  { %v147_v44 = vpop.permute.xlu0 %146 }
  0xb3   :  { %v83_v42 = vpop.permute.xlu1 %82 }
  0xb4   :  { %v86_v49 = vsel %vm84_vm6, %v83_v42, %v81_v36  ;;  %v85_v57 = vsel %vm84_vm6, %v81_v36, %v83_v42 }
  0xb5   :  { %v91_v52 = vmul.f32 %v89_v29, %v86_v49  ;;  %v92_v4 = vmul.f32 %v89_v29, %v85_v57 }
  0xb6   :  { %v160_v47 = vpop.permute.xlu0 %159 }
  0xb7   :  { %v113_v43 = vpop.permute.xlu1 %112  ;;  %v93_v5 = vadd.f32 %v91_v52, %v78_v62 }
  0xb8   :  { %v116_v50 = vsel %vm114_vm7, %v113_v43, %v111_v39  ;;  %v115_v53 = vsel %vm114_vm7, %v111_v39, %v113_v43 }
  0xb9   :  { %v121_v54 = vmul.f32 %v119_v28, %v116_v50  ;;  %v122_v0 = vmul.f32 %v119_v28, %v115_v53  ;;  %v94_v28 = vadd.f32 %v92_v4, %v79_v18 }
  0xba   :  { %v132_v63 = vpop.permute.xlu0 %131 }
  0xbb   :  { %v98_v46 = vpop.permute.xlu1 %97  ;;  %v129_v6 = vadd.f32 %v127_v59, %v121_v54  ;;  %v130_v19 = vadd.f32 %v128_v60, %v122_v0 }
  0xbc   :  { %v101_v55 = vsel %vm99_vm9, %v98_v46, %v96_v41  ;;  %v100_v7 = vsel %vm99_vm9, %v96_v41, %v98_v46 }
  0xbd   :  { %v106_v1 = vmul.f32 %v104_v32, %v101_v55  ;;  %v107_v20 = vmul.f32 %v104_v32, %v100_v7 }
  0xbe   :  { %v175_v23 = vpop.permute.xlu0 %174 }
  0xbf   :  { %v149_v48 = vpop.permute.xlu1 %148  ;;  %v108_v21 = vadd.f32 %v106_v1, %v93_v5  ;;  %v109_v38 = vadd.f32 %v107_v20, %v94_v28 }
  0xc0   :  { %v151_v9 = vsel %vm150_vm10, %v147_v44, %v149_v48  ;;  %v152_v10 = vsel %vm150_vm10, %v149_v48, %v147_v44 }
  0xc1   :  { %v157_v24 = vmul.f32 %v401_v31, %v151_v9  ;;  %v158_v25 = vmul.f32 %v401_v31, %v152_v10  ;;  %v195_v39 = vsel %vm189_vm14, %v108_v21, 0.0 }
  0xc2   :  { %v212_v46 = vpop.permute.xlu0 %211 }
  0xc3   :  { %v162_v56 = vpop.permute.xlu1 %161 }
  0xc4   :  { %v164_v2 = vsel %vm163_vm11, %v160_v47, %v162_v56  ;;  %v165_v3 = vsel %vm163_vm11, %v162_v56, %v160_v47 }
  0xc5   :  { %v170_v13 = vmul.f32 %v168_v34, %v164_v2  ;;  %v171_v14 = vmul.f32 %v168_v34, %v165_v3 }
  0xc7   :  { %v134_v8 = vpop.permute.xlu1 %133  ;;  %v172_v35 = vadd.f32 %v170_v13, %v157_v24  ;;  %v173_v32 = vadd.f32 %v171_v14, %v158_v25 }
  0xc8   :  { %v136_v11 = vsel %vm135_vm12, %v132_v63, %v134_v8  ;;  %v137_v12 = vsel %vm135_vm12, %v134_v8, %v132_v63 }
  0xc9   :  { %v142_v15 = vmul.f32 %v140_v37, %v136_v11  ;;  %v143_v16 = vmul.f32 %v140_v37, %v137_v12 }
  0xcb   :  { %v144_v26 = vadd.f32 %v142_v15, %v129_v6  ;;  %v177_v27 = vpop.permute.xlu1 %176  ;;  %v145_v29 = vadd.f32 %v143_v16, %v130_v19 }
  0xcc   :  { %v179_v30 = vsel %vm178_vm13, %v175_v23, %v177_v27  ;;  %v180_v34 = vsel %vm178_vm13, %v177_v27, %v175_v23 }
  0xcd   :  { %v185_v36 = vmul.f32 %v403_v33, %v179_v30  ;;  %v186_v37 = vmul.f32 %v403_v33, %v180_v34  ;;  %v197_v31 = vadd.f32 %v195_v39, %v144_v26  ;;  %v198_v42 = vadd.f32 %v145_v29, %v109_v38 }
  0xcf   :  { %v187_v40 = vadd.f32 %v185_v36, %v172_v35  ;;  %v188_v41 = vadd.f32 %v186_v37, %v173_v32 }
  0xd1   :  { %v206_v43 = vsel %vm200_vm15, %v188_v41, 0.0  ;;  %v207_v44 = vadd.f32 %v197_v31, %v187_v40 }
  0xd2   :  { %v208_v47 = vadd.f32 %v206_v43, %v198_v42 }
  0xd3   :  { %v214_v48 = vadd.f32 %v212_v46, %v207_v44 }
  0xd4   :  { %v215_v45 = vadd.f32 %v212_v46, %v208_v47 }
  0xd5   :  { %v216_v49 = vmul.f32 0.5, %v214_v48 }
  0xd6   :  { %v217_v50 = vmul.f32 0.5, %v215_v45 }
  0xd7   :  { %271 = vtanh.f32 %v216_v49 }
  0xd8   :  { %273 = vtanh.f32 %v217_v50 }
  0xe1   :  { %v272_v51 = vpop.eup %271 }
  0xe2   :  { %v274_v52 = vpop.eup %273  ;;  %v220_v33 = vmul.f32 0.5, %v272_v51 }
  0xe3   :  { %v221_v53 = vmul.f32 0.5, %v274_v52 }
  0xe4   :  { %v222_v54 = vadd.f32 0.5, %v220_v33 }
  0xe5   :  { %v223_v55 = vadd.f32 0.5, %v221_v53 }
  0xe6   :  { %v224_v56 = vmul.f32 %v222_v54, %v386_v17 }
  0xe7   :  { %v225_v57 = vmul.f32 %v223_v55, %v390_v22 }
  0xe8   :  { %226 = vst [vmem:[#allocation5] sm:$0xff] %v224_v56 }
  0xe9   :  { %227 = vst [vmem:[#allocation5 + $0x8] sm:$0xff] %v225_v57 }
  0xea   :  { %308 = shalt.err (!%p305_p12)
}
  0xeb   :  { %s309_s16 = scalar_lea.hbm %s470_s4, 256 }
  0xec   :  { %p310_p13 = scmp.ne.s32.totalorder %s470_s4, %s309_s16  ;;  %p313_p0 = scmp.lt.u32.totalorder %s309_s16, %s470_s4 }
  0xee   :  { %p315_p1 = pnand %p313_p0, %p310_p13 }
  0xf0   :  { %318 = shalt.err (!%p315_p1)
}
  0xf1   :  { %237 = dma.vmem_to_hbm [thread:$0]  %s235_s12, 256, %s470_s4, [#allocation4]  }
  0xf2   :  { %321 = dma.done.wait [#allocation4], 256  }
  0xf3   :  { %322 = vsyncadd [#allocation4], 4294967040 }
  0xf4   :  { %241 = vsyncpa [#allocation3], 1 }
  0xf5   :  { %242 = vsyncpa [#allocation4], 1 }

</bundles_post_ra>
